<compile_context>
chip_gen: v7x
topology: tpu7x:2x2x1
jax: 0.10.0
libtpu: 0.0.40
codegen_flags: <defaults>
</compile_context>

<pallas_src>
import jax
import jax.numpy as jnp
from jax.experimental import pallas as pl
from jax.experimental.pallas import tpu as pltpu


def logistic_regression_kernel(x_ref, wt_ref, b_ref, o_ref):
    # x_ref: (TB, IN), wt_ref: (IN, OUT_P), b_ref: (1, OUT_P), o_ref: (TB, OUT_P)
    x = x_ref[...]
    wt = wt_ref[...]
    b = b_ref[...]
    # linear: x @ W_t + b   (MXU matmul, f32 accumulate, no in-kernel transpose)
    logits = jnp.dot(x, wt, preferred_element_type=jnp.float32) + b
    # sigmoid: exp on the EUP, f32 math throughout (v5e-safe), exact divide
    o_ref[...] = (1.0 / (1.0 + jnp.exp(-logits))).astype(o_ref.dtype)


def _round_up(v, m):
    return ((v + m - 1) // m) * m


def logistic_regression(x, w, b, *, max_block_b=512):
    """x: (B, IN) f32, w: (OUT, IN) f32 (PyTorch nn.Linear layout), b: (OUT,) f32
    -> (B, OUT) f32 == sigmoid(x @ w.T + b)."""
    B, IN = x.shape
    OUT = w.shape[0]

    # Lane-dense output: pad OUT up to a multiple of 128 lanes.
    OUT_P = _round_up(OUT, 128)
    # Batch tile: multiple of 8 sublanes, capped at 512 rows (fits comfortably in
    # v7x's smaller scoped-VMEM budget with double-buffered x/out tiles).
    TB = min(max_block_b, _round_up(B, 8))
    B_P = _round_up(B, TB)

    # Pre-transpose W in the wrapper -> (IN, OUT_P); zero-pad extra lanes/rows.
    w_t = jnp.zeros((IN, OUT_P), dtype=jnp.float32).at[:, :OUT].set(w.T)
    b_p = jnp.zeros((1, OUT_P), dtype=jnp.float32).at[:, :OUT].set(b.reshape(1, OUT))
    x_p = x if B_P == B else jnp.pad(x, ((0, B_P - B), (0, 0)))

    out = pl.pallas_call(
        logistic_regression_kernel,
        out_shape=jax.ShapeDtypeStruct((B_P, OUT_P), jnp.float32),
        grid_spec=pl.GridSpec(
            grid=(B_P // TB,),
            in_specs=[
                pl.BlockSpec((TB, IN), lambda i: (i, 0)),       # x tile, pipelined
                pl.BlockSpec((IN, OUT_P), lambda i: (0, 0)),    # W_t resident
                pl.BlockSpec((1, OUT_P), lambda i: (0, 0)),     # bias resident
            ],
            out_specs=pl.BlockSpec((TB, OUT_P), lambda i: (i, 0)),
        ),
        compiler_params=pltpu.CompilerParams(
            dimension_semantics=("parallel",),
        ),
    )(x_p, w_t, b_p)

    # Slice away batch / lane padding.
    return out[:B, :OUT]


if __name__ == "__main__":
    key = jax.random.PRNGKey(0)
    kx, kw, kb = jax.random.split(key, 3)

    B, IN_FEATURES, OUT_FEATURES = 8, 2, 1

    # Deterministic synthetic parameters (mimic nn.Linear(2, 1) shapes).
    x = jax.random.normal(kx, (B, IN_FEATURES), dtype=jnp.float32)
    w = jax.random.uniform(kw, (OUT_FEATURES, IN_FEATURES),
                           minval=-0.7, maxval=0.7, dtype=jnp.float32)
    b = jax.random.uniform(kb, (OUT_FEATURES,),
                           minval=-0.7, maxval=0.7, dtype=jnp.float32)

    out = logistic_regression(x, w, b)
    jax.block_until_ready(out)

    # Reference check in plain JAX
    ref = jax.nn.sigmoid(x @ w.T + b)
    assert out.shape == (B, OUT_FEATURES)
    assert jnp.allclose(out, ref, atol=1e-5, rtol=1e-5)

    print("KERNEL_OK")
</pallas_src>

<mosaic_0001>
module attributes {stable_mosaic.version = 11 : i64} {
  func.func @logistic_regression_kernel(%arg0: i32, %arg1: memref<8x2xf32, #tpu.memory_space<vmem>>, %arg2: memref<2x128xf32, #tpu.memory_space<vmem>>, %arg3: memref<1x128xf32, #tpu.memory_space<vmem>>, %arg4: memref<8x128xf32, #tpu.memory_space<vmem>>) attributes {dimension_semantics = [#tpu.dimension_semantics<parallel>], iteration_bounds = array<i64: 1>, scalar_prefetch = 0 : i64, scratch_operands = 0 : i64, tpu.core_type = #tpu.core_type<tc>, window_params = [{transform_indices = @transform_0, window_bounds = array<i64: 8, 2>}, {pipeline_mode = #tpu.pipeline_mode<synchronous>, transform_indices = @transform_1, window_bounds = array<i64: 2, 128>}, {pipeline_mode = #tpu.pipeline_mode<synchronous>, transform_indices = @transform_2, window_bounds = array<i64: 1, 128>}, {transform_indices = @transform_3, window_bounds = array<i64: 8, 128>}]} {
    %c0 = arith.constant 0 : index
    %c0_0 = arith.constant 0 : index
    %0 = vector.load %arg1[%c0, %c0_0] : memref<8x2xf32, #tpu.memory_space<vmem>>, vector<8x2xf32>
    %c0_1 = arith.constant 0 : index
    %c0_2 = arith.constant 0 : index
    %1 = vector.load %arg2[%c0_1, %c0_2] : memref<2x128xf32, #tpu.memory_space<vmem>>, vector<2x128xf32>
    %c0_3 = arith.constant 0 : index
    %c0_4 = arith.constant 0 : index
    %2 = vector.load %arg3[%c0_3, %c0_4] : memref<1x128xf32, #tpu.memory_space<vmem>>, vector<1x128xf32>
    %cst = arith.constant dense<0.000000e+00> : vector<8x128xf32>
    %3 = tpu.matmul %0, %1, %cst {dimension_numbers = #tpu.dot_dimension_numbers<[1], [0], [0], [1], [0, 0, 1, 1], [], []>} : vector<8x2xf32>, vector<2x128xf32>, vector<8x128xf32> -> vector<8x128xf32>
    %4 = vector.broadcast %2 : vector<1x128xf32> to vector<8x128xf32>
    %5 = arith.addf %3, %4 : vector<8x128xf32>
    %cst_5 = arith.constant 0.000000e+00 : f32
    %6 = vector.broadcast %cst_5 : f32 to vector<8x128xf32>
    %7 = arith.subf %6, %5 : vector<8x128xf32>
    %8 = math.exp %7 : vector<8x128xf32>
    %cst_6 = arith.constant 1.000000e+00 : f32
    %9 = vector.broadcast %cst_6 : f32 to vector<8x128xf32>
    %10 = arith.addf %9, %8 : vector<8x128xf32>
    %cst_7 = arith.constant 1.000000e+00 : f32
    %11 = vector.broadcast %cst_7 : f32 to vector<8x128xf32>
    %12 = arith.divf %11, %10 : vector<8x128xf32>
    %c0_8 = arith.constant 0 : index
    %c0_9 = arith.constant 0 : index
    %13 = vector.load %arg4[%c0_8, %c0_9] : memref<8x128xf32, #tpu.memory_space<vmem>>, vector<8x128xf32>
    tpu.vector_store %arg4[%c0_8, %c0_9], %12 {strides = array<i32>} : memref<8x128xf32, #tpu.memory_space<vmem>>, vector<8x128xf32>,
    return
  }
  func.func @transform_0(%arg0: i32) -> (i32, i32) {
    %c0_i32 = arith.constant 0 : i32
    %c0_i32_0 = arith.constant 0 : i32
    return %arg0, %c0_i32 : i32, i32
  }
  func.func @transform_1(%arg0: i32) -> (i32, i32) {
    %c0_i32 = arith.constant 0 : i32
    %c0_i32_0 = arith.constant 0 : i32
    %c0_i32_1 = arith.constant 0 : i32
    return %c0_i32, %c0_i32_0 : i32, i32
  }
  func.func @transform_2(%arg0: i32) -> (i32, i32) {
    %c0_i32 = arith.constant 0 : i32
    %c0_i32_0 = arith.constant 0 : i32
    %c0_i32_1 = arith.constant 0 : i32
    return %c0_i32, %c0_i32_0 : i32, i32
  }
  func.func @transform_3(%arg0: i32) -> (i32, i32) {
    %c0_i32 = arith.constant 0 : i32
    %c0_i32_0 = arith.constant 0 : i32
    return %arg0, %c0_i32 : i32, i32
  }
}

</mosaic_0001>

<bundles_post_ra>
// kernel: tpu_custom_call.1
= control target key start
LH: loop header
LB: loop body
LE: loop exit
PB: predicated region body
PF: predicated region fallthrough
CT: control target
= control target key end

     0   :  { %vm28_vm0 = vcmask 1041408   ;;  %v164_v2 = vmov 0.0   ;;  %vm165_vm1 = vmmov 0   ;;  %vm24_vm2 = vcmask 15360   ;;  %s208_s0 = inlined_call_operand.vmem [shape: f32[8,2], index: 0, kind: input, shape index: {}]   ;;  %s209_s1 = inlined_call_operand.vmem [shape: f32[2,128], index: 1, kind: input, shape index: {}]   ;;  %s210_s2 = inlined_call_operand.vmem [shape: f32[1,128], index: 2, kind: input, shape index: {}]   ;;  %s211_s3 = inlined_call_operand.hbm [shape: f32[8,128], index: 3, kind: output, shape index: {}]  }
   0x1   :  { %v16_v0 = vld [vmem:[%s209_s1] sm:$0x3]  ;;  %128 = vmatprep.subr.mxu0 %v164_v2  ;;  %130 = vmatprep.mubr.msk.f32.mxu0 %vm165_vm1, %v164_v2 }
   0x2   :  { %v15_v1 = vld [vmem:[%s208_s0] sm:$0xff] }
   0x3   :  { %8 = vsyncpa [#allocation3], 0  ;;  %129 = vmatpush3.msk.msra.mxu0 %vm28_vm0, %v16_v0  ;;  %v123_v3 = vld [vmem:[%s210_s2] ss:$0 sm:$0xff]  ;;  %s166_s0 = smov [#allocation2]  }
   0x4   :  { %131 = vmatmul.mubr.msk.f32.vlgmr.msra.gmra.mrb[0].mxu0 %vm24_vm2, %v15_v1  ;;  %s115_s1 = sshll.u32 %s166_s0, 4  ;;  %s116_s1 = int_to_ptr.vmem [resolvable:$true] %s115_s1 }
   0x5   :  { %s140_s18 = scalar_lea.vmem %s116_s1, 128  ;;  %p145_p1 = scmp.lt.s32.totalorder %s116_s1, %s116_s1 }
   0x6   :  { %p141_p0 = scmp.ne.s32.totalorder %s116_s1, %s140_s18  ;;  %p146_p2 = scmp.lt.s32.totalorder %s140_s18, %s140_s18 }
   0x8   :  { %p147_p3 = por %p146_p2, %p145_p1 }
   0xa   :  { %p148_p4 = pnand %p147_p3, %p141_p0 }
  0xd7   :  { %v98_v4 = vpop.f32.mrb[0].mxu0 }
  0xd8   :  { %v99_v5 = vadd.f32 %v123_v3, %v98_v4  ;;  %v132_v6 = vpop.f32.mrb[1].mxu0 }
  0xda   :  { %v102_v7 = vsub.f32 0.0, %v99_v5 }
  0xdc   :  { %v103_v8 = vmul.f32 1.442695, %v102_v7 }
  0xde   :  { %136 = vpow2.f32 %v103_v8 }
  0xe8   :  { %v137_v9 = vpop.eup %136 }
  0xe9   :  { %v105_v10 = vadd.f32 1.0, %v137_v9 }
  0xeb   :  { %138 = vrcp.f32 %v105_v10 }
  0xf5   :  { %v139_v11 = vpop.eup %138 }
  0xf6   :  { %108 = vst [vmem:[#allocation2] sm:$0xff] %v139_v11 }
  0xf7   :  { %151 = shalt.err (!%p148_p4)
}
  0xf8   :  { %s152_s20 = scalar_lea.hbm %s211_s3, 128 }
  0xf9   :  { %p153_p5 = scmp.ne.s32.totalorder %s211_s3, %s152_s20  ;;  %p156_p6 = scmp.lt.u32.totalorder %s152_s20, %s211_s3 }
  0xfb   :  { %p158_p7 = pnand %p156_p6, %p153_p5 }
  0xfd   :  { %161 = shalt.err (!%p158_p7)
}
  0xfe   :  { %118 = dma.vmem_to_hbm [thread:$0]  %s116_s1, 128, %s211_s3, [#allocation3]  }
  0xff   :  { %162 = dma.done.wait [#allocation3], 128  }
 0x100   :  { %163 = vsyncadd [#allocation3], 4294967168 }
 0x101   :  { %122 = vsyncpa [#allocation3], 1 }

</bundles_post_ra>
